<compile_context>
chip_gen: v7x
topology: tpu7x:2x2x1
jax: 0.10.0
libtpu: 0.0.40
codegen_flags: <defaults>
</compile_context>

<pallas_src>
import math

import jax
import jax.numpy as jnp
from jax.experimental import pallas as pl
from jax.experimental.pallas import tpu as pltpu


# ------------------------------ Pallas kernel -------------------------------
def _gcn_kernel(a_ref, xw_ref, o_ref):
    """out_tile[i] += A_hat[i, k] @ XW[k]  (f32 accumulate in the output block).

    a_ref : (tile_m, tile_k)   streamed A_hat tile (bf16 or f32)
    xw_ref: (n_pad, f_out_pad) resident X@W        (same dtype as A_hat)
    o_ref : (tile_m, f_out_pad) f32 output block, resident across the k axis
    """
    k = pl.program_id(1)
    tile_k = a_ref.shape[1]

    @pl.when(k == 0)
    def _init():
        o_ref[...] = jnp.zeros_like(o_ref)

    off = pl.multiple_of(k * tile_k, 128)
    o_ref[...] += jnp.dot(a_ref[...], xw_ref[pl.ds(off, tile_k), :],
                          preferred_element_type=jnp.float32)


# --------------------------------- glue --------------------------------------
def _round_up(x, m):
    return (x + m - 1) // m * m


def normalized_adjacency(edge_index, num_nodes, *, padded_nodes=None,
                         dtype=jnp.float32):
    """Dense A_hat matching the PyTorch module (duplicate edges sum).

    Built directly at the padded size and streaming dtype so no extra N^2
    pad/astype passes are needed before the kernel.
    """
    if padded_nodes is None:
        padded_nodes = num_nodes
    loop = jnp.arange(num_nodes, dtype=edge_index.dtype)
    row = jnp.concatenate([edge_index[0], loop])
    col = jnp.concatenate([edge_index[1], loop])
    deg = jnp.zeros((num_nodes,), jnp.float32).at[row].add(1.0)
    deg_inv_sqrt = jnp.where(deg > 0, 1.0 / jnp.sqrt(deg), 0.0)   # inf -> 0
    norm = (deg_inv_sqrt[row] * deg_inv_sqrt[col]).astype(dtype)
    a = jnp.zeros((padded_nodes, padded_nodes), dtype).at[row, col].add(norm)
    return a


def gcn_layer_forward(x, edge_index, weight, *, tile_m=512, tile_k=512,
                      stream_dtype=jnp.bfloat16, vmem_limit_bytes=None):
    """out = A_hat @ (x @ weight) via a tiled, fused Pallas kernel.

    stream_dtype: dtype in which A_hat and XW are streamed / held in VMEM.
      bf16 (default) halves the HBM-bound A_hat traffic and hits the bf16 MXU
      path on v6e/v7x; accumulation is always f32.  Use jnp.float32 for exact
      reference numerics.
    """
    assert tile_m % 128 == 0 and tile_k % 128 == 0, "tiles must be 128-multiples"
    n, f_in = x.shape
    f_out = weight.shape[1]
    f_out_pad = _round_up(f_out, 128)

    # Clamp tiles for small graphs; keep >= 2 row tiles when possible so the
    # ("parallel", ...) row axis can shard across v7x's two TensorCores.
    n128 = _round_up(n, 128)
    tile_k = min(tile_k, n128)
    tile_m = min(tile_m, n128)
    if n128 >= 256 and n128 // tile_m < 2:
        tile_m = max(128, (tile_m // 2) // 128 * 128)
    n_pad = _round_up(n, math.lcm(tile_m, tile_k))

    # A_hat: built once, padded, already in the streaming dtype.
    a_hat = normalized_adjacency(edge_index, n, padded_nodes=n_pad,
                                 dtype=stream_dtype)

    # XW: tiny N x F_in x F_out matmul in f32, cast once, padded, VMEM-resident.
    xw = jnp.dot(x.astype(jnp.float32), weight.astype(jnp.float32),
                 preferred_element_type=jnp.float32)
    xw = jnp.pad(xw, ((0, n_pad - n), (0, f_out_pad - f_out))).astype(stream_dtype)

    # Only raise the scoped-VMEM limit when the config actually needs it
    # (v5e default is 16 MiB, v6e/v7x 32 MiB; v7x physical is 64 MiB per TC).
    if vmem_limit_bytes is None:
        itm = jnp.dtype(stream_dtype).itemsize
        need = (2 * tile_m * tile_k * itm          # double-buffered A_hat tile
                + 2 * n_pad * f_out_pad * itm      # resident XW (conservative)
                + 2 * tile_m * f_out_pad * 4)      # f32 output block
        if need > 16 * 1024 * 1024:
            vmem_limit_bytes = min(int(need * 5 // 4), 64 * 1024 * 1024)

    cp_kwargs = dict(dimension_semantics=("parallel", "arbitrary"))
    if vmem_limit_bytes is not None:
        cp_kwargs["vmem_limit_bytes"] = int(vmem_limit_bytes)

    grid = (n_pad // tile_m, n_pad // tile_k)       # (row tiles, k tiles)
    out = pl.pallas_call(
        _gcn_kernel,
        out_shape=jax.ShapeDtypeStruct((n_pad, f_out_pad), jnp.float32),
        grid=grid,
        in_specs=[
            # A_hat: the only streamed operand.
            pl.BlockSpec((tile_m, tile_k), lambda i, k: (i, k)),
            # XW: constant index_map -> fetched once, resident across the grid.
            pl.BlockSpec((n_pad, f_out_pad), lambda i, k: (0, 0)),
        ],
        out_specs=pl.BlockSpec((tile_m, f_out_pad), lambda i, k: (i, 0)),
        compiler_params=pltpu.CompilerParams(**cp_kwargs),
    )(a_hat, xw)

    return out[:n, :f_out]


# --------------------------------- main --------------------------------------
if __name__ == "__main__":
    # Small shapes implied by the module: x (N, C_in), W (C_in, C_out).
    num_nodes, in_channels, out_channels = 256, 128, 128

    key = jax.random.PRNGKey(0)
    kx, kw, ke = jax.random.split(key, 3)

    x = jax.random.normal(kx, (num_nodes, in_channels), jnp.float32)
    weight = jax.random.normal(kw, (in_channels, out_channels), jnp.float32)

    # Deterministic ring graph plus random chords (undirected), shape (2, E).
    idx = jnp.arange(num_nodes, dtype=jnp.int32)
    ring_src = jnp.concatenate([idx, (idx + 1) % num_nodes])
    ring_dst = jnp.concatenate([(idx + 1) % num_nodes, idx])
    chord = jax.random.randint(ke, (2, 64), 0, num_nodes, dtype=jnp.int32)
    src = jnp.concatenate([ring_src, chord[0], chord[1]])
    dst = jnp.concatenate([ring_dst, chord[1], chord[0]])
    edge_index = jnp.stack([src, dst], axis=0)

    # Pure-JAX reference (same math as the PyTorch module).
    a_hat_ref = normalized_adjacency(edge_index, num_nodes, dtype=jnp.float32)
    ref = (a_hat_ref @ x) @ weight
    ref_scale = jnp.max(jnp.abs(ref)) + 1e-6

    # f32 streaming path: must match the reference tightly.
    out_f32 = jax.block_until_ready(
        gcn_layer_forward(x, edge_index, weight, stream_dtype=jnp.float32))
    assert out_f32.shape == (num_nodes, out_channels)
    assert bool(jnp.all(jnp.isfinite(out_f32)))
    rel_f32 = float(jnp.max(jnp.abs(out_f32 - ref)) / ref_scale)
    assert rel_f32 < 1e-4, f"f32 mismatch vs reference: rel_err={rel_f32}"

    # bf16 streaming path (default): half the HBM bytes on the A_hat stream.
    out_bf16 = jax.block_until_ready(gcn_layer_forward(x, edge_index, weight))
    assert out_bf16.shape == (num_nodes, out_channels)
    assert bool(jnp.all(jnp.isfinite(out_bf16)))
    rel_bf16 = float(jnp.max(jnp.abs(out_bf16 - ref)) / ref_scale)
    assert rel_bf16 < 2e-2, f"bf16 mismatch vs reference: rel_err={rel_bf16}"

    print("KERNEL_OK")
</pallas_src>

<mosaic_0001>
module attributes {stable_mosaic.version = 11 : i64} {
  func.func @_gcn_kernel(%arg0: i32, %arg1: i32, %arg2: memref<128x256xf32, #tpu.memory_space<vmem>>, %arg3: memref<256x128xf32, #tpu.memory_space<vmem>>, %arg4: memref<128x128xf32, #tpu.memory_space<vmem>>) attributes {dimension_semantics = [#tpu.dimension_semantics<parallel>, #tpu.dimension_semantics<arbitrary>], iteration_bounds = array<i64: 2, 1>, scalar_prefetch = 0 : i64, scratch_operands = 0 : i64, tpu.core_type = #tpu.core_type<tc>, window_params = [{transform_indices = @transform_0, window_bounds = array<i64: 128, 256>}, {pipeline_mode = #tpu.pipeline_mode<synchronous>, transform_indices = @transform_1, window_bounds = array<i64: 256, 128>}, {transform_indices = @transform_2, window_bounds = array<i64: 128, 128>}]} {
    %c0_i32 = arith.constant 0 : i32
    %0 = arith.cmpi eq, %arg1, %c0_i32 : i32
    %1 = arith.extui %0 : i1 to i32
    %c0_i32_0 = arith.constant 0 : i32
    %2 = arith.cmpi ne, %1, %c0_i32_0 : i32
    scf.if %2 {
      %cst_7 = arith.constant 0.000000e+00 : f32
      %12 = vector.broadcast %cst_7 : f32 to vector<128x128xf32>
      %c0_8 = arith.constant 0 : index
      %c0_9 = arith.constant 0 : index
      %13 = vector.load %arg4[%c0_8, %c0_9] : memref<128x128xf32, #tpu.memory_space<vmem>>, vector<128x128xf32>
      tpu.vector_store %arg4[%c0_8, %c0_9], %12 {strides = array<i32>} : memref<128x128xf32, #tpu.memory_space<vmem>>, vector<128x128xf32>,
    } else {
    }
    %c256_i32 = arith.constant 256 : i32
    %3 = arith.muli %arg1, %c256_i32 : i32
    %4 = tpu.assume_multiple %3, 128 : i32
    %c0 = arith.constant 0 : index
    %c0_1 = arith.constant 0 : index
    %5 = vector.load %arg4[%c0, %c0_1] : memref<128x128xf32, #tpu.memory_space<vmem>>, vector<128x128xf32>
    %c0_2 = arith.constant 0 : index
    %c0_3 = arith.constant 0 : index
    %6 = vector.load %arg2[%c0_2, %c0_3] : memref<128x256xf32, #tpu.memory_space<vmem>>, vector<128x256xf32>
    %7 = arith.index_cast %4 : i32 to index
    %c0_4 = arith.constant 0 : index
    %8 = vector.load %arg3[%7, %c0_4] : memref<256x128xf32, #tpu.memory_space<vmem>>, vector<256x128xf32>
    %cst = arith.constant dense<0.000000e+00> : vector<128x128xf32>
    %9 = tpu.matmul %6, %8, %cst {dimension_numbers = #tpu.dot_dimension_numbers<[1], [0], [0], [1], [0, 0, 1, 1], [], []>} : vector<128x256xf32>, vector<256x128xf32>, vector<128x128xf32> -> vector<128x128xf32>
    %10 = arith.addf %5, %9 : vector<128x128xf32>
    %c0_5 = arith.constant 0 : index
    %c0_6 = arith.constant 0 : index
    %11 = vector.load %arg4[%c0_5, %c0_6] : memref<128x128xf32, #tpu.memory_space<vmem>>, vector<128x128xf32>
    tpu.vector_store %arg4[%c0_5, %c0_6], %10 {strides = array<i32>} : memref<128x128xf32, #tpu.memory_space<vmem>>, vector<128x128xf32>,
    return
  }
  func.func @transform_0(%arg0: i32, %arg1: i32) -> (i32, i32) {
    %c0_i32 = arith.constant 0 : i32
    return %arg0, %arg1 : i32, i32
  }
  func.func @transform_1(%arg0: i32, %arg1: i32) -> (i32, i32) {
    %c0_i32 = arith.constant 0 : i32
    %c0_i32_0 = arith.constant 0 : i32
    %c0_i32_1 = arith.constant 0 : i32
    return %c0_i32, %c0_i32_0 : i32, i32
  }
  func.func @transform_2(%arg0: i32, %arg1: i32) -> (i32, i32) {
    %c0_i32 = arith.constant 0 : i32
    %c0_i32_0 = arith.constant 0 : i32
    return %arg0, %c0_i32 : i32, i32
  }
}

</mosaic_0001>

<bundles_post_ra>
// kernel: tpu_custom_call.1
= control target key start
LH: loop header
LB: loop body
LE: loop exit
PB: predicated region body
PF: predicated region fallthrough
CT: control target
= control target key end

     0   :  { %7 = vsyncpa [#allocation3], 0  ;;  %s1258_s0 = inlined_call_operand.hbm [shape: f32[256,256], index: 0, kind: input, shape index: {}]   ;;  %s1259_s1 = inlined_call_operand.hbm [shape: f32[256,128], index: 1, kind: input, shape index: {}]   ;;  %s1260_s2 = inlined_call_operand.hbm [shape: f32[256,128], index: 2, kind: output, shape index: {}]  }
   0x1   :  { %9 = vsyncpa [#allocation3 + $0x1], 0 }
   0x2   :  { %10 = vsyncpa [#allocation6], 0 }
   0x3   :  { %11 = vsyncpa [#allocation4], 0 }
   0x4   :  { %13 = vsyncpa [#allocation4 + $0x1], 0  ;;  %s985_s9 = smov 0   ;;  %s987_s10 = smov 0  }
   0x5   :  { %s989_s11 = smov 0   ;;  %s991_s12 = smov 0  }
   0x6   :  { %s993_s13 = smov 0   ;;  %s995_s14 = smov 0  }
   0x7 LB: > { %s586_s15 = sadd.s32 4294967295, %s959_s14   ;;  %s587_s16 = sadd.s32 4294967294, %s959_s14   ;;  %s959_s14 = sphi %s995_s14, %s19_s14   ;;  %s955_s13 = sphi %s993_s13, %s1284_s13   ;;  %s951_s12 = sphi %s991_s12, %s1283_s12   ;;  %s947_s11 = sphi %s989_s11, %s1282_s11   ;;  %s943_s10 = sphi %s987_s10, %s1281_s10   ;;  %s939_s9 = sphi %s985_s9, %s1280_s9  }
   0x8   : > { %p53_p0 = scmp.ne.s32.totalorder %s943_s10, %s939_s9  ;;  %p1019_p1 = scmp.eq.s32.totalorder %s586_s15, 0 }
   0x9   : > { %p1023_p2 = scmp.eq.s32.totalorder %s586_s15, 1  ;;  %p104_p3 = scmp.eq.s32.totalorder %s587_s16, 1 }
   0xa   : > { %s1265_s17 = scalar_select %p1019_p1, 1, 0 }
   0xb   : > { %s1266_s18 = scalar_select %p1023_p2, 1, 0 }
   0xc   : > { %p1029_p4 = por %p1019_p1, %p53_p0  ;;  %p588_p5 = scmp.ge.s32.totalorder %s959_s14, 1 }
   0xd   : > { %p1034_p6 = por %p104_p3, %p53_p0  ;;  %p111_p7 = scmp.lt.s32.totalorder %s959_s14, 3 }
   0xe   : > { %s1267_s19 = scalar_select %p1029_p4, 1, 0 }
   0xf   : > { %s1268_s20 = scalar_select %p1034_p6, 1, 0 }
  0x10   : > { %p1039_p8 = pnand %p588_p5, %p111_p7  ;;  %s961_s22 = smov [#allocation5]  }
  0x11   : > { %s123_s23 = sshll.u32 %s961_s22, 4  ;;  %s31_s25 = sadd.s32 1, %s955_s13  ;;  %s124_s23 = int_to_ptr.vmem [resolvable:$true] %s123_s23 }
  0x12   : > { %s1269_s21 = scalar_select %p1039_p8, 1, 0 }
  0x13   : > { %p743_p9 = pneg %p1039_p8  ;;  %s815_s28 = scalar_lea.hbm %s1259_s1, 4096 }
  0x14   : > { %p816_p12 = scmp.ne.s32.totalorder %s1259_s1, %s815_s28  ;;  %p822_p5 = scmp.lt.u32.totalorder %s815_s28, %s1259_s1 }
  0x15   : > { %p1048_p11 = pnand %p743_p9, %p1019_p1 }
  0x17   : > { %p817_p13 = pneg %p1048_p11 }
  0x19   : > { %p818_p0 = pnand %p817_p13, %p816_p12 }
  0x1b   : > { %p819_p3 = pneg %p818_p0 }
  0x1d   : > { %p824_p7 = pnand %p822_p5, %p819_p3 }
  0x1f   : > { %827 = shalt.err (!%p824_p7)
}
  0x20   : > { %s828_s5 = scalar_lea.vmem %s124_s23, 4096  ;;  %p836_p1 = scmp.lt.s32.totalorder %s124_s23, %s124_s23 }
  0x21   : > { %p829_p9 = scmp.ne.s32.totalorder %s124_s23, %s828_s5  ;;  %p837_p4 = scmp.lt.s32.totalorder %s828_s5, %s828_s5 }
  0x23   : > { %p831_p10 = pnand %p829_p9, %p817_p13  ;;  %p838_p8 = por %p837_p4, %p836_p1 }
  0x25   : > { %p832_p6 = pneg %p831_p10 }
  0x27   : > { %p839_p2 = pnand %p838_p8, %p832_p6 }
  0x29   : > { %842 = shalt.err (!%p839_p2)
}
  0x2a   : > { %s962_s6 = smov 128   ;;  %s963_s7 = smov 8  }
  0x2b   : > { %746 = dma.hbm_to_vmem [thread:$0]  (!%p1048_p11), %s1259_s1, 4096, %s124_s23, [#allocation6], %s962_s6, %s962_s6, %s963_s7  }
  0x2c   : > { %p33_p1 = scmp.ge.s32.totalorder %s31_s25, 2  ;;  %s40_s16 = sadd.s32 1, %s947_s11 }
  0x2d   : > { %p47_p2 = scmp.ne.s32.totalorder %s947_s11, %s943_s10  ;;  %p48_p4 = scmp.eq.s32.totalorder %s959_s14, 0 }
  0x2e   : > { %s1286_s25 = smov (%p33_p1, %s31_s25), 0  ;;  %p1272_p8 = scmp.ne.s32.totalorder %s1266_s18, 0 }
  0x2f   : > { %p1075_p6 = por %p48_p4, %p47_p2  ;;  %s35_s24 = ssub.s32 %s955_s13, %s1286_s25 }
  0x30   : > { %p1081_p10 = por %p1272_p8, %p47_p2  ;;  %p756_p12 = scmp.lt.s32.totalorder %s959_s14, 2 }
  0x31   : > { %p38_p11 = scmp.eq.s32.totalorder %s35_s24, 0  ;;  %s137_s23 = sand.u32 1, %s947_s11  }
  0x32   : > { %s591_s27 = sshll.u32 %s137_s23, 8  ;;  %s605_s29 = sshll.u32 %s955_s13, 12 }
  0x33   : > { %s1090_s28 = scalar_select %p38_p11, %s947_s11, %s40_s16  }
  0x34   : > { %s1096_s4 = scalar_lea.hbm %s1258_s0, %s605_s29  ;;  %s141_s18 = scalar_lea.vmem [#allocation2], %s591_s27 }
  0x35   : > { %s151_s5 = sshll.u32 %s141_s18, 4  ;;  %p1102_p13 = pnand %p756_p12, %p1075_p6  ;;  %s1098_s5 = int_to_ptr.vmem [resolvable:$true] %s151_s5 }
  0x36   : > { %s1106_s7 = scalar_lea.sflag [#allocation3], %s137_s23  ;;  %s843_s8 = scalar_lea.hbm %s1096_s4, 4096 }
  0x37   : > { %p844_p0 = scmp.ne.s32.totalorder %s1096_s4, %s843_s8  ;;  %p845_p3 = pneg %p1102_p13 }
  0x38   : > { %s848_s22 = scalar_lea.hbm %s1258_s0, 8192  ;;  %p849_p9 = scmp.lt.u32.totalorder %s1096_s4, %s1258_s0 }
  0x39   : > { %p846_p5 = pnand %p845_p3, %p844_p0  ;;  %p850_p1 = scmp.lt.u32.totalorder %s848_s22, %s843_s8 }
  0x3a   : > { %p852_p4 = scmp.lt.u32.totalorder %s843_s8, %s1096_s4 }
  0x3b   : > { %p847_p7 = pneg %p846_p5  ;;  %p851_p2 = por %p850_p1, %p849_p9 }
  0x3d   : > { %p853_p6 = por %p852_p4, %p851_p2 }
  0x3f   : > { %p854_p8 = pnand %p853_p6, %p847_p7 }
  0x41   : > { %857 = shalt.err (!%p854_p8)
}
  0x42   : > { %s858_s23 = scalar_lea.vmem %s1098_s5, 4096  ;;  %s964_s29 = smov [#allocation2]  }
  0x43   : > { %p859_p12 = scmp.ne.s32.totalorder %s1098_s5, %s858_s23  ;;  %s863_s30 = sshll.u32 %s964_s29, 4  ;;  %s864_s30 = int_to_ptr.vmem [resolvable:$false] %s863_s30 }
  0x44   : > { %s865_s3 = scalar_lea.vmem %s864_s30, 8192  ;;  %p866_p5 = scmp.lt.s32.totalorder %s1098_s5, %s864_s30 }
  0x45   : > { %p861_p11 = pnand %p859_p12, %p845_p3  ;;  %p867_p9 = scmp.lt.s32.totalorder %s865_s3, %s858_s23 }
  0x47   : > { %p862_p0 = pneg %p861_p11  ;;  %p868_p1 = por %p867_p9, %p866_p5 }
  0x49   : > { %p869_p2 = pnand %p868_p1, %p862_p0 }
  0x4b   : > { %872 = shalt.err (!%p869_p2)
}
  0x4c   : > { %s965_s18 = smov 256   ;;  %s966_s8 = smov 16  }
  0x4d   : > { %750 = dma.hbm_to_vmem [thread:$0]  (!%p1102_p13), %s1096_s4, 4096, %s1098_s5, %s1106_s7, %s965_s18, %s965_s18, %s966_s8  }
  0x4e   : > { %p1275_p3 = scmp.ne.s32.totalorder %s1269_s21, 0 }
  0x4f   : > { %s1137_s15 = sand.u32 (!%p1275_p3), 1, %s943_s10   ;;  %p1276_p7 = scmp.ne.s32.totalorder (!%p1275_p3), %s1267_s19, 0 }
  0x50   : > { %163 = sbr.rel (%p1275_p3) target bundleno = 384 (0x180), region = 28  ;;  %s596_s16 = sshll.u32 (!%p1275_p3), %s1137_s15, 8 }
  0x51   : > { %s166_s22 = scalar_lea.sflag (!%p1275_p3), [#allocation3], %s1137_s15  ;;  %s1141_s24 = scalar_lea.vmem (!%p1275_p3), [#allocation2], %s596_s16 }
  0x57   : > { %926 = dma.done.wait (%p1276_p7), %s166_s22, 4096  }
  0x58   : > { %928 = vsyncadd (%p1276_p7), %s166_s22, 4294963200  ;;  %p1277_p13 = scmp.ne.s32.totalorder %s1265_s17, 0 }
  0x5a   : > { %930 = dma.done.wait (%p1277_p13), [#allocation6], 4096  }
  0x5b   : > { %932 = vsyncadd (%p1277_p13), [#allocation6], 4294963200  ;;  %v283_v0 = vld [vmem:[#allocation5 + $0x80] sm:$0xff]  ;;  %v284_v1 = vld [vmem:[#allocation5 + $0x88] sm:$0xff]  ;;  %s598_s17 = sshll.u32 %s1137_s15, 7  ;;  %s606_s21 = sshll.u32 %s951_s12, 11 }
  0x5c   : > { %v267_v2 = vld [vmem:[#allocation5] sm:$0xff]  ;;  %v687_v3 = vpack.c.bf16 %v284_v1, %v283_v0  ;;  %v268_v4 = vld [vmem:[#allocation5 + $0x8] sm:$0xff]  ;;  %v285_v5 = vld [vmem:[#allocation5 + $0x90] sm:$0xff]  ;;  %s1184_s19 = scalar_lea.vmem [#allocation7], %s598_s17  ;;  %s1205_s7 = scalar_lea.hbm %s1260_s2, %s606_s21 }
  0x5d   : > { %v286_v6 = vld [vmem:[#allocation5 + $0x98] sm:$0xff]  ;;  %v689_v7 = vpack.c.bf16 %v268_v4, %v267_v2  ;;  %v269_v9 = vld [vmem:[#allocation5 + $0x10] sm:$0xff]  ;;  %v287_v11 = vld [vmem:[#allocation5 + $0xa0] sm:$0xff]  ;;  %s490_s4 = sshll.u32 %s1184_s19, 4  ;;  %s477_s12 = scalar_lea.sflag [#allocation4], %s1137_s15  ;;  %s1207_s4 = int_to_ptr.vmem [resolvable:$true] %s490_s4 }
  0x5e   : > { %v691_v8 = vpack.c.bf16 %v286_v6, %v285_v5  ;;  %v270_v10 = vld [vmem:[#allocation5 + $0x18] sm:$0xff]  ;;  %688 = vmatprep.subr.bf16.mxu0 %v687_v3  ;;  %719 = vmatprep.subr.bf16.mxu1 %v687_v3  ;;  %v288_v12 = vld [vmem:[#allocation5 + $0xa8] sm:$0xff]  ;;  %v271_v15 = vld [vmem:[#allocation5 + $0x20] sm:$0xff]  ;;  %s873_s27 = scalar_lea.vmem %s1207_s4, 2048  ;;  %s967_s23 = smov [#allocation7]  }
  0x5f   : > { %690 = vmatpush3.bf16.msra.mxu0 %v689_v7  ;;  %727 = vmatpush3.bf16.msra.mxu1 %v689_v7  ;;  %v693_v13 = vpack.c.bf16 %v270_v10, %v269_v9  ;;  %v695_v14 = vpack.c.bf16 %v288_v12, %v287_v11  ;;  %v272_v16 = vld [vmem:[#allocation5 + $0x28] sm:$0xff]  ;;  %v289_v17 = vld [vmem:[#allocation5 + $0xb0] sm:$0xff]  ;;  %v290_v18 = vld [vmem:[#allocation5 + $0xb8] sm:$0xff]  ;;  %p874_p4 = scmp.ne.s32.totalorder %s1207_s4, %s873_s27  ;;  %s877_s29 = sshll.u32 %s967_s23, 4  ;;  %s878_s29 = int_to_ptr.vmem [resolvable:$false] %s877_s29 }
  0x60   : > { %692 = vmatprep.subr.bf16.mxu0 %v691_v8  ;;  %720 = vmatprep.subr.bf16.mxu1 %v691_v8  ;;  %v697_v19 = vpack.c.bf16 %v272_v16, %v271_v15  ;;  %v699_v20 = vpack.c.bf16 %v290_v18, %v289_v17  ;;  %v273_v21 = vld [vmem:[#allocation5 + $0x30] sm:$0xff]  ;;  %v274_v22 = vld [vmem:[#allocation5 + $0x38] sm:$0xff]  ;;  %v291_v23 = vld [vmem:[#allocation5 + $0xc0] sm:$0xff]  ;;  %s879_s30 = scalar_lea.vmem %s878_s29, 4096  ;;  %p880_p12 = scmp.lt.s32.totalorder %s1207_s4, %s878_s29 }
  0x61   : > { %v292_v24 = vld [vmem:[#allocation5 + $0xc8] sm:$0xff]  ;;  %v701_v27 = vpack.c.bf16 %v274_v22, %v273_v21  ;;  %v275_v29 = vld [vmem:[#allocation5 + $0x40] sm:$0xff]  ;;  %v293_v31 = vld [vmem:[#allocation5 + $0xd0] sm:$0xff]  ;;  %p875_p6 = pnand %p874_p4, %p1081_p10  ;;  %p881_p11 = scmp.lt.s32.totalorder %s879_s30, %s873_s27 }
  0x62   : > { %v235_v25 = vld [vmem:[%s1141_s24 + $0x8] sm:$0xff]  ;;  %v703_v28 = vpack.c.bf16 %v292_v24, %v291_v23  ;;  %v294_v32 = vld [vmem:[#allocation5 + $0xd8] sm:$0xff]  ;;  %v277_v35 = vld [vmem:[#allocation5 + $0x50] sm:$0xff] }
  0x63   : > { %694 = vmatpush3.bf16.msra.mxu0 %v693_v13  ;;  %728 = vmatpush3.bf16.msra.mxu1 %v693_v13  ;;  %v251_v26 = vld [vmem:[%s1141_s24 + $0x88] sm:$0xff]  ;;  %v707_v34 = vpack.c.bf16 %v294_v32, %v293_v31  ;;  %v278_v36 = vld [vmem:[#allocation5 + $0x58] sm:$0xff]  ;;  %v295_v37 = vld [vmem:[#allocation5 + $0xe0] sm:$0xff]  ;;  %p876_p8 = pneg %p875_p6  ;;  %p882_p0 = por %p881_p11, %p880_p12 }
  0x64   : > { %696 = vmatprep.subr.bf16.mxu0 %v695_v14  ;;  %721 = vmatprep.subr.bf16.mxu1 %v695_v14  ;;  %v276_v30 = vld [vmem:[#allocation5 + $0x48] sm:$0xff]  ;;  %v709_v39 = vpack.c.bf16 %v278_v36, %v277_v35  ;;  %v279_v41 = vld [vmem:[#allocation5 + $0x60] sm:$0xff]  ;;  %v297_v43 = vld [vmem:[#allocation5 + $0xf0] sm:$0xff] }
  0x65   : > { %363 = vmatprep.mubr.f32.mxu0 %v235_v25  ;;  %403 = vmatprep.mubr.f32.mxu1 %v251_v26  ;;  %v705_v33 = vpack.c.bf16 %v276_v30, %v275_v29  ;;  %v296_v38 = vld [vmem:[#allocation5 + $0xe8] sm:$0xff]  ;;  %v298_v44 = vld [vmem:[#allocation5 + $0xf8] sm:$0xff]  ;;  %v281_v47 = vld [vmem:[#allocation5 + $0x70] sm:$0xff]  ;;  %p883_p5 = pnand %p882_p0, %p876_p8 }
  0x66   : > { %v711_v40 = vpack.c.bf16 %v296_v38, %v295_v37  ;;  %v280_v42 = vld [vmem:[#allocation5 + $0x68] sm:$0xff]  ;;  %v715_v46 = vpack.c.bf16 %v298_v44, %v297_v43  ;;  %v282_v48 = vld [vmem:[#allocation5 + $0x78] sm:$0xff]  ;;  %v234_v50 = vld [vmem:[%s1141_s24] sm:$0xff] }
  0x67   : > { %698 = vmatpush3.bf16.msra.mxu0 %v697_v19  ;;  %729 = vmatpush3.bf16.msra.mxu1 %v697_v19  ;;  %v713_v45 = vpack.c.bf16 %v280_v42, %v279_v41  ;;  %v717_v49 = vpack.c.bf16 %v282_v48, %v281_v47  ;;  %v250_v51 = vld [vmem:[%s1141_s24 + $0x80] sm:$0xff]  ;;  %v237_v52 = vld [vmem:[%s1141_s24 + $0x18] sm:$0xff]  ;;  %v236_v54 = vld [vmem:[%s1141_s24 + $0x10] sm:$0xff] }
  0x68   : > { %700 = vmatprep.subr.bf16.mxu0 %v699_v20  ;;  %722 = vmatprep.subr.bf16.mxu1 %v699_v20  ;;  %v253_v53 = vld [vmem:[%s1141_s24 + $0x98] sm:$0xff]  ;;  %v252_v55 = vld [vmem:[%s1141_s24 + $0x90] sm:$0xff]  ;;  %v239_v56 = vld [vmem:[%s1141_s24 + $0x28] sm:$0xff] }
  0x69   : > { %v255_v57 = vld [vmem:[%s1141_s24 + $0xa8] sm:$0xff]  ;;  %v238_v58 = vld [vmem:[%s1141_s24 + $0x20] sm:$0xff]  ;;  %v241_v60 = vld [vmem:[%s1141_s24 + $0x38] sm:$0xff] }
  0x6a   : > { %v254_v59 = vld [vmem:[%s1141_s24 + $0xa0] sm:$0xff]  ;;  %v257_v61 = vld [vmem:[%s1141_s24 + $0xb8] sm:$0xff]  ;;  %v240_v62 = vld [vmem:[%s1141_s24 + $0x30] sm:$0xff] }
  0x6b   : > { %702 = vmatpush3.bf16.msra.mxu0 %v701_v27  ;;  %730 = vmatpush3.bf16.msra.mxu1 %v701_v27  ;;  %v256_v63 = vld [vmem:[%s1141_s24 + $0xb0] sm:$0xff]  ;;  %v243_v0 = vld [vmem:[%s1141_s24 + $0x48] sm:$0xff]  ;;  %v242_v2 = vld [vmem:[%s1141_s24 + $0x40] sm:$0xff] }
  0x6c   : > { %704 = vmatprep.subr.bf16.mxu0 %v703_v28  ;;  %723 = vmatprep.subr.bf16.mxu1 %v703_v28  ;;  %v259_v1 = vld [vmem:[%s1141_s24 + $0xc8] sm:$0xff]  ;;  %v258_v3 = vld [vmem:[%s1141_s24 + $0xc0] sm:$0xff]  ;;  %v245_v4 = vld [vmem:[%s1141_s24 + $0x58] sm:$0xff] }
  0x6d   : > { %v261_v5 = vld [vmem:[%s1141_s24 + $0xd8] sm:$0xff]  ;;  %v244_v6 = vld [vmem:[%s1141_s24 + $0x50] sm:$0xff]  ;;  %v247_v8 = vld [vmem:[%s1141_s24 + $0x68] sm:$0xff] }
  0x6e   : > { %v260_v7 = vld [vmem:[%s1141_s24 + $0xd0] sm:$0xff]  ;;  %v263_v9 = vld [vmem:[%s1141_s24 + $0xe8] sm:$0xff]  ;;  %v246_v10 = vld [vmem:[%s1141_s24 + $0x60] sm:$0xff] }
  0x6f   : > { %706 = vmatpush3.bf16.msra.mxu0 %v705_v33  ;;  %731 = vmatpush3.bf16.msra.mxu1 %v705_v33  ;;  %v262_v11 = vld [vmem:[%s1141_s24 + $0xe0] sm:$0xff]  ;;  %v249_v12 = vld [vmem:[%s1141_s24 + $0x78] sm:$0xff]  ;;  %v248_v14 = vld [vmem:[%s1141_s24 + $0x70] sm:$0xff] }
  0x70   : > { %708 = vmatprep.subr.bf16.mxu0 %v707_v34  ;;  %724 = vmatprep.subr.bf16.mxu1 %v707_v34  ;;  %v265_v13 = vld [vmem:[%s1141_s24 + $0xf8] sm:$0xff]  ;;  %v264_v15 = vld [vmem:[%s1141_s24 + $0xf0] sm:$0xff] }
  0x73   : > { %710 = vmatpush3.bf16.msra.mxu0 %v709_v39  ;;  %732 = vmatpush3.bf16.msra.mxu1 %v709_v39 }
  0x74   : > { %712 = vmatprep.subr.bf16.mxu0 %v711_v40  ;;  %725 = vmatprep.subr.bf16.mxu1 %v711_v40 }
  0x77   : > { %714 = vmatpush3.bf16.msra.mxu0 %v713_v45  ;;  %733 = vmatpush3.bf16.msra.mxu1 %v713_v45 }
  0x78   : > { %716 = vmatprep.subr.bf16.mxu0 %v715_v46  ;;  %726 = vmatprep.subr.bf16.mxu1 %v715_v46 }
  0x7b   : > { %718 = vmatpush3.bf16.msra.mxu0 %v717_v49  ;;  %734 = vmatpush3.bf16.msra.mxu1 %v717_v49 }
  0x7e   : > { %364 = vmatmul.mubr.f32.vlgmr.msra.gmra.mrb[0].mxu0 %v234_v50  ;;  %404 = vmatmul.mubr.f32.vlgmr.msra.gmra.mrb[0].mxu1 %v250_v51 }
  0x7f   : > { %368 = vmatprep.mubr.f32.mxu0 %v237_v52  ;;  %408 = vmatprep.mubr.f32.mxu1 %v253_v53 }
  0x82   : > { %369 = vmatmul.mubr.f32.gmra.mrb[2].mxu0 %v236_v54  ;;  %409 = vmatmul.mubr.f32.gmra.mrb[2].mxu1 %v252_v55 }
  0x83   : > { %373 = vmatprep.mubr.f32.mxu0 %v239_v56  ;;  %413 = vmatprep.mubr.f32.mxu1 %v255_v57 }
  0x86   : > { %374 = vmatmul.mubr.f32.gmra.mrb[4].mxu0 %v238_v58  ;;  %414 = vmatmul.mubr.f32.gmra.mrb[4].mxu1 %v254_v59 }
  0x87   : > { %378 = vmatprep.mubr.f32.mxu0 %v241_v60  ;;  %418 = vmatprep.mubr.f32.mxu1 %v257_v61 }
  0x8a   : > { %379 = vmatmul.mubr.f32.gmra.mrb[6].mxu0 %v240_v62  ;;  %419 = vmatmul.mubr.f32.gmra.mrb[6].mxu1 %v256_v63 }
  0x8b   : > { %383 = vmatprep.mubr.f32.mxu0 %v243_v0  ;;  %423 = vmatprep.mubr.f32.mxu1 %v259_v1 }
  0x8e   : > { %384 = vmatmul.mubr.f32.gmra.mrb[8].mxu0 %v242_v2  ;;  %424 = vmatmul.mubr.f32.gmra.mrb[8].mxu1 %v258_v3 }
  0x8f   : > { %388 = vmatprep.mubr.f32.mxu0 %v245_v4  ;;  %428 = vmatprep.mubr.f32.mxu1 %v261_v5 }
  0x92   : > { %389 = vmatmul.mubr.f32.gmra.mrb[10].mxu0 %v244_v6  ;;  %429 = vmatmul.mubr.f32.gmra.mrb[10].mxu1 %v260_v7 }
  0x93   : > { %393 = vmatprep.mubr.f32.mxu0 %v247_v8  ;;  %433 = vmatprep.mubr.f32.mxu1 %v263_v9 }
  0x96   : > { %394 = vmatmul.mubr.f32.gmra.mrb[12].mxu0 %v246_v10  ;;  %434 = vmatmul.mubr.f32.gmra.mrb[12].mxu1 %v262_v11 }
  0x97   : > { %398 = vmatprep.mubr.f32.mxu0 %v249_v12  ;;  %438 = vmatprep.mubr.f32.mxu1 %v265_v13 }
  0x9a   : > { %399 = vmatmul.mubr.f32.gmra.mrb[14].mxu0 %v248_v14  ;;  %439 = vmatmul.mubr.f32.gmra.mrb[14].mxu1 %v264_v15 }
 0x151   : > { %v639_v16 = vpop.f32.mrb[0].mxu0  ;;  %v663_v17 = vpop.f32.mrb[0].mxu1 }
 0x152   : > { %v640_v18 = vpop.f32.mrb[1].mxu0  ;;  %v664_v19 = vpop.f32.mrb[1].mxu1 }
 0x153   : > { %v641_v20 = vadd.f32 %v640_v18, %v639_v16  ;;  %v665_v21 = vadd.f32 %v664_v19, %v663_v17 }
 0x155   : > { %v642_v22 = vpop.f32.mrb[2].mxu0  ;;  %v666_v23 = vpop.f32.mrb[2].mxu1  ;;  %460 = vst [vmem:[%s1184_s19] sm:$0xff] %v641_v20  ;;  %468 = vst [vmem:[%s1184_s19 + $0x40] sm:$0xff] %v665_v21 }
 0x156   : > { %v643_v24 = vpop.f32.mrb[3].mxu0  ;;  %v667_v25 = vpop.f32.mrb[3].mxu1 }
 0x157   : > { %v644_v26 = vadd.f32 %v643_v24, %v642_v22  ;;  %v668_v27 = vadd.f32 %v667_v25, %v666_v23 }
 0x159   : > { %v645_v28 = vpop.f32.mrb[4].mxu0  ;;  %v669_v29 = vpop.f32.mrb[4].mxu1  ;;  %461 = vst [vmem:[%s1184_s19 + $0x8] sm:$0xff] %v644_v26  ;;  %469 = vst [vmem:[%s1184_s19 + $0x48] sm:$0xff] %v668_v27 }
 0x15a   : > { %v646_v30 = vpop.f32.mrb[5].mxu0  ;;  %v670_v31 = vpop.f32.mrb[5].mxu1 }
 0x15b   : > { %v647_v32 = vadd.f32 %v646_v30, %v645_v28  ;;  %v671_v33 = vadd.f32 %v670_v31, %v669_v29 }
 0x15d   : > { %v648_v34 = vpop.f32.mrb[6].mxu0  ;;  %v672_v35 = vpop.f32.mrb[6].mxu1  ;;  %462 = vst [vmem:[%s1184_s19 + $0x10] sm:$0xff] %v647_v32  ;;  %470 = vst [vmem:[%s1184_s19 + $0x50] sm:$0xff] %v671_v33 }
 0x15e   : > { %v649_v36 = vpop.f32.mrb[7].mxu0  ;;  %v673_v37 = vpop.f32.mrb[7].mxu1 }
 0x15f   : > { %v650_v38 = vadd.f32 %v649_v36, %v648_v34  ;;  %v674_v39 = vadd.f32 %v673_v37, %v672_v35 }
 0x161   : > { %v651_v40 = vpop.f32.mrb[8].mxu0  ;;  %v675_v41 = vpop.f32.mrb[8].mxu1  ;;  %463 = vst [vmem:[%s1184_s19 + $0x18] sm:$0xff] %v650_v38  ;;  %471 = vst [vmem:[%s1184_s19 + $0x58] sm:$0xff] %v674_v39 }
 0x162   : > { %v652_v42 = vpop.f32.mrb[9].mxu0  ;;  %v676_v43 = vpop.f32.mrb[9].mxu1 }
 0x163   : > { %v653_v44 = vadd.f32 %v652_v42, %v651_v40  ;;  %v677_v45 = vadd.f32 %v676_v43, %v675_v41 }
 0x165   : > { %v654_v46 = vpop.f32.mrb[10].mxu0  ;;  %v678_v47 = vpop.f32.mrb[10].mxu1  ;;  %464 = vst [vmem:[%s1184_s19 + $0x20] sm:$0xff] %v653_v44  ;;  %472 = vst [vmem:[%s1184_s19 + $0x60] sm:$0xff] %v677_v45 }
 0x166   : > { %v655_v48 = vpop.f32.mrb[11].mxu0  ;;  %v679_v49 = vpop.f32.mrb[11].mxu1 }
 0x167   : > { %v656_v50 = vadd.f32 %v655_v48, %v654_v46  ;;  %v680_v51 = vadd.f32 %v679_v49, %v678_v47 }
 0x169   : > { %v657_v52 = vpop.f32.mrb[12].mxu0  ;;  %v681_v53 = vpop.f32.mrb[12].mxu1  ;;  %465 = vst [vmem:[%s1184_s19 + $0x28] sm:$0xff] %v656_v50  ;;  %473 = vst [vmem:[%s1184_s19 + $0x68] sm:$0xff] %v680_v51 }
 0x16a   : > { %v658_v54 = vpop.f32.mrb[13].mxu0  ;;  %v682_v55 = vpop.f32.mrb[13].mxu1 }
 0x16b   : > { %v659_v56 = vadd.f32 %v658_v54, %v657_v52  ;;  %v683_v57 = vadd.f32 %v682_v55, %v681_v53 }
 0x16d   : > { %v660_v58 = vpop.f32.mrb[14].mxu0  ;;  %v684_v59 = vpop.f32.mrb[14].mxu1  ;;  %466 = vst [vmem:[%s1184_s19 + $0x30] sm:$0xff] %v659_v56  ;;  %474 = vst [vmem:[%s1184_s19 + $0x70] sm:$0xff] %v683_v57 }
 0x16e   : > { %v661_v60 = vpop.f32.mrb[15].mxu0  ;;  %v685_v61 = vpop.f32.mrb[15].mxu1 }
 0x16f   : > { %v662_v62 = vadd.f32 %v661_v60, %v660_v58  ;;  %v686_v63 = vadd.f32 %v685_v61, %v684_v59 }
 0x171   : > { %467 = vst [vmem:[%s1184_s19 + $0x38] sm:$0xff] %v662_v62  ;;  %475 = vst [vmem:[%s1184_s19 + $0x78] sm:$0xff] %v686_v63 }
 0x172   : > { %886 = shalt.err (!%p883_p5)
}
 0x173   : > { %s887_s3 = scalar_lea.hbm %s1205_s7, 2048  ;;  %s891_s16 = scalar_lea.hbm %s1260_s2, 4096 }
 0x174   : > { %p888_p9 = scmp.ne.s32.totalorder %s1205_s7, %s887_s3  ;;  %p892_p3 = scmp.lt.u32.totalorder %s1205_s7, %s1260_s2 }
 0x175   : > { %p893_p7 = scmp.lt.u32.totalorder %s891_s16, %s887_s3  ;;  %p895_p4 = scmp.lt.u32.totalorder %s887_s3, %s1205_s7 }
 0x176   : > { %p889_p1 = pnand %p888_p9, %p1081_p10 }
 0x177   : > { %p894_p13 = por %p893_p7, %p892_p3 }
 0x178   : > { %p890_p2 = pneg %p889_p1 }
 0x179   : > { %p896_p6 = por %p895_p4, %p894_p13 }
 0x17b   : > { %p897_p8 = pnand %p896_p6, %p890_p2 }
 0x17d   : > { %900 = shalt.err (!%p897_p8)
}
 0x17e   : > { %s968_s17 = smov 128   ;;  %s969_s19 = smov 8  }
 0x17f   : > { %741 = dma.vmem_to_hbm [thread:$0]  (%p1081_p10), %s1207_s4, 2048, %s1205_s7, %s477_s12, %s968_s17, %s968_s17, %s969_s19  }
 0x180 PF: > { %s505_s21 = sand.u32 1, %s939_s9   ;;  %p1278_p12 = scmp.ne.s32.totalorder %s1268_s20, 0 }
 0x181   : > { %p1279_p11 = scmp.ge.s32.totalorder %s959_s14, 2  ;;  %s506_s5 = scalar_lea.sflag [#allocation4], %s505_s21 }
 0x183   : > { %p752_p0 = pnand %p1279_p11, %p1278_p12 }
 0x185   : > { %934 = dma.done.wait (!%p752_p0), %s506_s5, 2048  }
 0x186   : > { %936 = vsyncadd (!%p752_p0), %s506_s5, 4294965248  ;;  %s19_s14 = sadd.s32 1, %s959_s14   ;;  %s1280_s9 = smov %s943_s10 }
 0x187   : > { %p16_p5 = scmp.ge.s32.totalorder %s19_s14, 4   ;;  %s1281_s10 = smov %s947_s11 }
 0x188   : > { %s1282_s11 = smov %s1090_s28  ;;  %s1283_s12 = smov %s955_s13 }
 0x189   : > { %s1284_s13 = smov %s1286_s25  ;;  %18 = sbr.rel (!%p16_p5) target bundleno = 7 (0x7), region = 82 }
 0x190   :  { %511 = vsyncpa [#allocation3], 1 }
 0x191   :  { %513 = vsyncpa [#allocation3 + $0x1], 1 }
 0x192   :  { %514 = vsyncpa [#allocation6], 1 }
 0x193   :  { %515 = vsyncpa [#allocation4], 1 }
 0x194   :  { %517 = vsyncpa [#allocation4 + $0x1], 1 }

</bundles_post_ra>
